<compile_context>
chip_gen: v7x
topology: tpu7x:2x2x1
jax: 0.10.0
libtpu: 0.0.40
codegen_flags: <defaults>
</compile_context>

<pallas_src>
import jax
import jax.numpy as jnp
from jax.experimental import pallas as pl
from jax.experimental.pallas import tpu as pltpu


def _add_kernel(a_ref, b_ref, o_ref):
    o_ref[...] = a_ref[...] + b_ref[...]


_TINY_INPUT_BYTES = 64 * 1024      # below: plain XLA add (fuses with neighbors)
_SMALL_INPUT_BYTES = 512 * 1024    # below: single-block pallas_call, no grid
_TARGET_TILE_BYTES = 4 << 20       # gridded path: ~4 MiB per-input tiles
_MIN_TILE_BYTES = 1 << 20          # don't shrink tiles below this for extra steps
_MIN_GRID_STEPS = 4                # 2x TensorCore count on v7x


def _slab_shape(total, itemsize):
    """Pick a lane/sublane-dense (rows, lane) slab covering `total` elements.

    lane is the widest of {2048,...,128} that still yields >= 8 rows; rows are
    padded up to a multiple of the dtype's sublane packing so every block is
    unmasked on both minor dims.
    """
    lane = 128
    for cand in (2048, 1024, 512, 256, 128):
        if total >= 8 * cand:
            lane = cand
            break
    sub = max(8, 32 // itemsize)   # sublane packing: 8 (32-bit), 16 (bf16), 32 (int8)
    padded = pl.cdiv(total, lane * sub) * (lane * sub)
    return padded // lane, lane, sub, padded


def _to_slab(x, rows, lane, padded):
    flat = x.reshape(-1)
    if padded > flat.size:
        flat = jnp.pad(flat, (0, padded - flat.size))
    return flat.reshape(rows, lane)


def _pallas_add_2d(a2d, b2d, sub):
    """Elementwise add of two equally-shaped lane-dense 2-D slabs."""
    R, C = a2d.shape
    itemsize = a2d.dtype.itemsize
    nbytes = R * C * itemsize

    # ---- small fast path: whole slab as one block, no grid -----------------
    if nbytes <= _SMALL_INPUT_BYTES:
        return pl.pallas_call(
            _add_kernel,
            out_shape=jax.ShapeDtypeStruct((R, C), a2d.dtype),
        )(a2d, b2d)

    # ---- gridded, pipelined path (C is a multiple of 128, C <= 2048) -------
    row_bytes = C * itemsize
    br = max(sub, min(R, (_TARGET_TILE_BYTES // row_bytes) // sub * sub))

    # Keep >= _MIN_GRID_STEPS row blocks (2 per v7x TensorCore) as long as each
    # tile stays >= _MIN_TILE_BYTES; otherwise fewer, larger tiles win.
    if pl.cdiv(R, br) < _MIN_GRID_STEPS:
        br_alt = pl.cdiv(pl.cdiv(R, _MIN_GRID_STEPS), sub) * sub
        if br_alt * row_bytes >= _MIN_TILE_BYTES:
            br = br_alt

    grid = (pl.cdiv(R, br),)
    spec = pl.BlockSpec((br, C), lambda i: (i, 0))
    return pl.pallas_call(
        _add_kernel,
        out_shape=jax.ShapeDtypeStruct((R, C), a2d.dtype),
        grid_spec=pltpu.PrefetchScalarGridSpec(
            num_scalar_prefetch=0,
            grid=grid,
            in_specs=[spec, spec],
            out_specs=spec,
        ),
        compiler_params=pltpu.CompilerParams(
            # "parallel" shards the row grid across v7x's two TensorCores and is
            # a no-op on v5e/v6e.  Swap to pltpu.CORE_PARALLEL if profiling
            # shows the grid is not actually split on v7x.
            dimension_semantics=("parallel",),
            # 3 arrays x 2 buffers x <=4 MiB tiles = <=24 MiB: safe on every
            # generation (v7x physical VMEM is 64 MiB; v5e default scoped is
            # only 16 MiB, hence the explicit limit).
            vmem_limit_bytes=32 << 20,
        ),
        # If the caller donates Xs[-1], add input_output_aliases={0: 0} here to
        # drop the separate output allocation (2 reads + 1 write either way).
    )(a2d, b2d)


def full_residual_connection(Xs, force_pallas=False):
    """JAX/Pallas equivalent of FullResidualConnection.forward."""
    assert len(Xs) >= 1
    if len(Xs) == 1:
        return Xs[-1]

    a = Xs[-1]
    b = Xs[-2]
    # TODO(synk): torch broadcasting / dtype promotion between Xs[-1] and Xs[-2]
    # is not supported; identical shape/dtype is required.
    assert a.shape == b.shape and a.dtype == b.dtype

    nbytes = a.size * a.dtype.itemsize
    if nbytes <= _TINY_INPUT_BYTES and not force_pallas:
        # Launch + DMA-setup overhead dwarfs the transfer; let XLA fuse it.
        return a + b

    orig_shape = a.shape
    total = a.size
    rows, lane, sub, padded = _slab_shape(total, a.dtype.itemsize)
    a2d = _to_slab(a, rows, lane, padded)
    b2d = _to_slab(b, rows, lane, padded)
    out2d = _pallas_add_2d(a2d, b2d, sub)
    out = out2d.reshape(-1)
    if padded > total:
        out = out[:total]
    return out.reshape(orig_shape)


if __name__ == "__main__":
    key = jax.random.PRNGKey(0)
    keys = jax.random.split(key, 10)

    # --- tiny NCHW inputs matching the module (batch=2, channels=4, 16x16) ---
    shape = (2, 4, 16, 16)
    x0 = jax.random.normal(keys[0], shape, dtype=jnp.float32)
    x1 = jax.random.normal(keys[1], shape, dtype=jnp.float32)
    x2 = jax.random.normal(keys[2], shape, dtype=jnp.float32)
    Xs = [x0, x1, x2]
    ref = x2 + x1

    # Default path: tiny input -> fused XLA add (per perf feedback).
    out = jax.block_until_ready(full_residual_connection(Xs))
    assert out.shape == ref.shape
    assert jnp.allclose(out, ref, atol=1e-6, rtol=1e-6)

    # Same tiny shape, forced through the Pallas single-block kernel.
    out_p = jax.block_until_ready(full_residual_connection(Xs, force_pallas=True))
    assert jnp.allclose(out_p, ref, atol=1e-6, rtol=1e-6)

    # Single-element case: identity pass-through.
    out_single = jax.block_until_ready(full_residual_connection([x0]))
    assert jnp.array_equal(out_single, x0)

    # Medium input (128 KiB/array): single-block Pallas path.
    med_shape = (2, 4, 64, 64)
    m0 = jax.random.normal(keys[3], med_shape, dtype=jnp.float32)
    m1 = jax.random.normal(keys[4], med_shape, dtype=jnp.float32)
    out_med = jax.block_until_ready(full_residual_connection([m0, m1]))
    assert jnp.allclose(out_med, m1 + m0, atol=1e-6, rtol=1e-6)

    # Large input (8 MiB/array): gridded, pipelined path with >= 4 grid steps.
    big_shape = (8, 64, 64, 64)
    y0 = jax.random.normal(keys[5], big_shape, dtype=jnp.float32)
    y1 = jax.random.normal(keys[6], big_shape, dtype=jnp.float32)
    out_big = jax.block_until_ready(full_residual_connection([y0, y1]))
    assert jnp.allclose(out_big, y1 + y0, atol=1e-6, rtol=1e-6)

    # Irregular element count (~2 MiB, not a multiple of 128): pad + slice path.
    irr_shape = (3, 347, 509)
    z0 = jax.random.normal(keys[7], irr_shape, dtype=jnp.float32)
    z1 = jax.random.normal(keys[8], irr_shape, dtype=jnp.float32)
    out_irr = jax.block_until_ready(full_residual_connection([z0, z1]))
    assert out_irr.shape == irr_shape
    assert jnp.allclose(out_irr, z1 + z0, atol=1e-6, rtol=1e-6)

    print("KERNEL_OK")
</pallas_src>

<mosaic_0001>
module attributes {stable_mosaic.version = 11 : i64} {
  func.func @_add_kernel(%arg0: memref<8x256xf32, #tpu.memory_space<vmem>>, %arg1: memref<8x256xf32, #tpu.memory_space<vmem>>, %arg2: memref<8x256xf32, #tpu.memory_space<vmem>>) attributes {dimension_semantics = [], scalar_prefetch = 0 : i64, scratch_operands = 0 : i64, tpu.core_type = #tpu.core_type<tc>} {
    %c0 = arith.constant 0 : index
    %c0_0 = arith.constant 0 : index
    %0 = vector.load %arg0[%c0, %c0_0] : memref<8x256xf32, #tpu.memory_space<vmem>>, vector<8x256xf32>
    %c0_1 = arith.constant 0 : index
    %c0_2 = arith.constant 0 : index
    %1 = vector.load %arg1[%c0_1, %c0_2] : memref<8x256xf32, #tpu.memory_space<vmem>>, vector<8x256xf32>
    %2 = arith.addf %0, %1 : vector<8x256xf32>
    %c0_3 = arith.constant 0 : index
    %c0_4 = arith.constant 0 : index
    %3 = vector.load %arg2[%c0_3, %c0_4] : memref<8x256xf32, #tpu.memory_space<vmem>>, vector<8x256xf32>
    tpu.vector_store %arg2[%c0_3, %c0_4], %2 {strides = array<i32>} : memref<8x256xf32, #tpu.memory_space<vmem>>, vector<8x256xf32>,
    return
  }
}

</mosaic_0001>

<bundles_post_ra>
// kernel: tpu_custom_call.1
= control target key start
LH: loop header
LB: loop body
LE: loop exit
PB: predicated region body
PF: predicated region fallthrough
CT: control target
= control target key end

     0   :  { %7 = vsyncpa [#allocation3], 0  ;;  %s189_s0 = inlined_call_operand.hbm [shape: f32[8,256], index: 0, kind: input, shape index: {}]   ;;  %s190_s1 = inlined_call_operand.hbm [shape: f32[8,256], index: 1, kind: input, shape index: {}]   ;;  %s191_s2 = inlined_call_operand.hbm [shape: f32[8,256], index: 2, kind: output, shape index: {}]  }
   0x1   :  { %8 = vsyncpa [#allocation6], 0 }
   0x2   :  { %9 = vsyncpa [#allocation4], 0  ;;  %s135_s9 = smov [#allocation2]   ;;  %s136_s11 = smov [#allocation5]  }
   0x3   :  { %s16_s10 = sshll.u32 %s135_s9, 4  ;;  %s26_s12 = sshll.u32 %s136_s11, 4  ;;  %s17_s10 = int_to_ptr.vmem [resolvable:$true] %s16_s10  ;;  %s27_s12 = int_to_ptr.vmem [resolvable:$true] %s26_s12 }
   0x4   :  { %s63_s15 = scalar_lea.hbm %s189_s0, 256 }
   0x5   :  { %p64_p0 = scmp.ne.s32.totalorder %s189_s0, %s63_s15  ;;  %p67_p1 = scmp.lt.u32.totalorder %s63_s15, %s189_s0 }
   0x7   :  { %p69_p2 = pnand %p67_p1, %p64_p0 }
   0x9   :  { %72 = shalt.err (!%p69_p2)
}
   0xa   :  { %s73_s20 = scalar_lea.vmem %s17_s10, 256  ;;  %p78_p4 = scmp.lt.s32.totalorder %s17_s10, %s17_s10 }
   0xb   :  { %p74_p3 = scmp.ne.s32.totalorder %s17_s10, %s73_s20  ;;  %p79_p5 = scmp.lt.s32.totalorder %s73_s20, %s73_s20 }
   0xd   :  { %p80_p6 = por %p79_p5, %p78_p4 }
   0xf   :  { %p81_p7 = pnand %p80_p6, %p74_p3 }
  0x11   :  { %84 = shalt.err (!%p81_p7)
}
  0x12   :  { %19 = dma.hbm_to_vmem [thread:$0]  %s189_s0, 256, %s17_s10, [#allocation3]  }
  0x13   :  { %s85_s25 = scalar_lea.hbm %s190_s1, 256 }
  0x14   :  { %p86_p8 = scmp.ne.s32.totalorder %s190_s1, %s85_s25  ;;  %p89_p9 = scmp.lt.u32.totalorder %s85_s25, %s190_s1 }
  0x16   :  { %p91_p10 = pnand %p89_p9, %p86_p8 }
  0x18   :  { %94 = shalt.err (!%p91_p10)
}
  0x19   :  { %s95_s30 = scalar_lea.vmem %s27_s12, 256  ;;  %p100_p12 = scmp.lt.s32.totalorder %s27_s12, %s27_s12 }
  0x1a   :  { %p96_p11 = scmp.ne.s32.totalorder %s27_s12, %s95_s30  ;;  %p101_p13 = scmp.lt.s32.totalorder %s95_s30, %s95_s30 }
  0x1c   :  { %p102_p0 = por %p101_p13, %p100_p12 }
  0x1e   :  { %p103_p1 = pnand %p102_p0, %p96_p11 }
  0x20   :  { %106 = shalt.err (!%p103_p1)
}
  0x21   :  { %29 = dma.hbm_to_vmem [thread:$0]  %s190_s1, 256, %s27_s12, [#allocation6]  }
  0x22   :  { %129 = dma.done.wait [#allocation3], 256  }
  0x23   :  { %130 = vsyncadd [#allocation3], 4294967040 }
  0x24   :  { %131 = dma.done.wait [#allocation6], 256  }
  0x25   :  { %132 = vsyncadd [#allocation6], 4294967040  ;;  %s137_s4 = smov [#allocation7]   ;;  %v36_v0 = vld [vmem:[#allocation2] sm:$0xff]  ;;  %v38_v1 = vld [vmem:[#allocation5] sm:$0xff] }
  0x26   :  { %s50_s5 = sshll.u32 %s137_s4, 4  ;;  %v37_v2 = vld [vmem:[#allocation2 + $0x8] sm:$0xff]  ;;  %v40_v3 = vadd.f32 %v38_v1, %v36_v0  ;;  %v39_v4 = vld [vmem:[#allocation5 + $0x8] sm:$0xff]  ;;  %s51_s5 = int_to_ptr.vmem [resolvable:$true] %s50_s5 }
  0x27   :  { %v41_v5 = vadd.f32 %v39_v4, %v37_v2  ;;  %s107_s6 = scalar_lea.vmem %s51_s5, 256  ;;  %p112_p3 = scmp.lt.s32.totalorder %s51_s5, %s51_s5 }
  0x28   :  { %42 = vst [vmem:[#allocation7] sm:$0xff] %v40_v3  ;;  %p108_p2 = scmp.ne.s32.totalorder %s51_s5, %s107_s6  ;;  %p113_p4 = scmp.lt.s32.totalorder %s107_s6, %s107_s6 }
  0x29   :  { %43 = vst [vmem:[#allocation7 + $0x8] sm:$0xff] %v41_v5 }
  0x2a   :  { %p114_p5 = por %p113_p4, %p112_p3 }
  0x2c   :  { %p115_p6 = pnand %p114_p5, %p108_p2 }
  0x2e   :  { %118 = shalt.err (!%p115_p6)
}
  0x2f   :  { %s119_s8 = scalar_lea.hbm %s191_s2, 256 }
  0x30   :  { %p120_p7 = scmp.ne.s32.totalorder %s191_s2, %s119_s8  ;;  %p123_p8 = scmp.lt.u32.totalorder %s119_s8, %s191_s2 }
  0x32   :  { %p125_p9 = pnand %p123_p8, %p120_p7 }
  0x34   :  { %128 = shalt.err (!%p125_p9)
}
  0x35   :  { %53 = dma.vmem_to_hbm [thread:$0]  %s51_s5, 256, %s191_s2, [#allocation4]  }
  0x36   :  { %133 = dma.done.wait [#allocation4], 256  }
  0x37   :  { %134 = vsyncadd [#allocation4], 4294967040 }
  0x38   :  { %57 = vsyncpa [#allocation3], 1 }
  0x39   :  { %58 = vsyncpa [#allocation6], 1 }
  0x3a   :  { %59 = vsyncpa [#allocation4], 1 }

</bundles_post_ra>
